<compile_context>
chip_gen: v6e
topology: v6e:2x2x1
jax: 0.10.0
libtpu: 0.0.40
codegen_flags: <defaults>
</compile_context>

<pallas_src>
import math

import jax
import jax.numpy as jnp
from jax import lax
from jax.experimental import pallas as pl
from jax.experimental.pallas import tpu as pltpu


# ----------------------------------------------------------------------------- helpers
def _round_up(x, m):
    return ((x + m - 1) // m) * m


def _make_gelu(approx):
    if approx:
        # tanh-approx GELU: the heavy lifting goes to the EUP slot (v6e/v7x).
        c = math.sqrt(2.0 / math.pi)
        return lambda x: 0.5 * x * (1.0 + jnp.tanh(c * (x + 0.044715 * (x * x * x))))
    # PyTorch nn.GELU default (exact erf formulation).
    inv_sqrt2 = 1.0 / math.sqrt(2.0)
    return lambda x: 0.5 * x * (1.0 + lax.erf(x * inv_sqrt2))


# ----------------------------------------------------------------------------- kernel
def _make_actor_critic_kernel(hidden_size, eps=1e-5, approx_gelu=False):
    inv_h = 1.0 / float(hidden_size)
    gelu = _make_gelu(approx_gelu)
    bf16 = jnp.bfloat16

    def kernel(x_ref, w_enc_ref, p_ref, q_ref, vec_enc_ref,
               w_g_ref, vec_g_ref, w_h1_ref, b_h1_ref,
               w_h2_ref, vec_out_ref, out_ref):
        x = x_ref[...]                                          # (TB, F_pad) f32

        # ---- fused per-key world encoders (block-diagonal bf16 weight) ------
        ve = vec_enc_ref[...]                                   # (3, KH_pad) f32
        h = jnp.dot(x.astype(bf16), w_enc_ref[...],
                    preferred_element_type=jnp.float32) + ve[0:1]
        h = gelu(h)                                             # pad lanes stay 0

        # per-key LayerNorm stats via factorized segment-mean: P pools each key
        # segment (1/H), Q broadcasts back.  Skinny f32 matmuls (negligible
        # FLOPs) — no dense KHxKH projection, no lane slicing / XLU concat.
        p = p_ref[...]                                          # (KH_pad, NK_pad)
        q = q_ref[...]                                          # (NK_pad, KH_pad)
        mu = jnp.dot(jnp.dot(h, p, preferred_element_type=jnp.float32), q,
                     preferred_element_type=jnp.float32)
        d = h - mu
        var = jnp.dot(jnp.dot(d * d, p, preferred_element_type=jnp.float32), q,
                      preferred_element_type=jnp.float32)
        hn = d * lax.rsqrt(var + eps) * ve[1:2] + ve[2:3]       # (TB, KH_pad)

        # ---- world_gather: Linear -> GELU -> LayerNorm ----------------------
        vg = vec_g_ref[...]                                     # (4, H_pad)
        g = jnp.dot(hn.astype(bf16), w_g_ref[...],
                    preferred_element_type=jnp.float32) + vg[0:1]
        g = gelu(g)                                             # pad lanes stay 0
        mu_g = jnp.sum(g, axis=-1, keepdims=True) * inv_h
        dg = (g - mu_g) * vg[3:4]                               # mask pad lanes
        var_g = jnp.sum(dg * dg, axis=-1, keepdims=True) * inv_h
        wr = dg * lax.rsqrt(var_g + eps) * vg[1:2] + vg[2:3]    # (TB, H_pad)

        # ---- fused critic + sub-actor heads ----------------------------------
        hh = jnp.dot(wr.astype(bf16), w_h1_ref[...],
                     preferred_element_type=jnp.float32) + b_h1_ref[...]
        hh = gelu(hh)                                           # (TB, HEAD_pad)
        vo = vec_out_ref[...]                                   # (2, OUT_pad)
        z = jnp.dot(hh.astype(bf16), w_h2_ref[...],
                    preferred_element_type=jnp.float32) + vo[0:1]
        out = jnp.where(vo[1:2] > 0.5, jnp.tanh(z), z)          # tanh on actor lanes only
        out_ref[...] = out.astype(out_ref.dtype)

    return kernel


# ----------------------------------------------------------------------------- param packing
def pack_params(params, feature_shape, action_shape, hidden_size,
                normalize_factor=1.0, output_activation="tanh"):
    """Build padded, fused (block-diagonal) parameter slabs for the kernel."""
    H = hidden_size
    f32, bf16 = jnp.float32, jnp.bfloat16
    n_keys = len(feature_shape)
    F_sum = int(sum(feature_shape))
    KH = n_keys * H
    A_sum = int(sum(action_shape))
    HEAD = (1 + len(action_shape)) * H
    OUT = 1 + A_sum

    F_pad = _round_up(F_sum, 128)
    KH_pad = _round_up(KH, 128)
    NK_pad = _round_up(n_keys, 128)
    H_pad = _round_up(H, 128)
    HEAD_pad = _round_up(HEAD, 128)
    OUT_pad = _round_up(OUT, 128)

    # --- per-key encoders -> one block-diagonal weight + packed vectors ------
    w_enc = jnp.zeros((F_pad, KH_pad), f32)
    b_enc = jnp.zeros((KH_pad,), f32)
    g_enc = jnp.zeros((KH_pad,), f32)
    be_enc = jnp.zeros((KH_pad,), f32)
    # factorized segment-mean: P pools each key segment, Q broadcasts back.
    p_enc = jnp.zeros((KH_pad, NK_pad), f32)
    q_enc = jnp.zeros((NK_pad, KH_pad), f32)
    row = 0
    for i, f in enumerate(feature_shape):
        c0 = i * H
        # fold normalize_factor into the encoder weight: (c*x)@W == x@(c*W)
        w_enc = w_enc.at[row:row + f, c0:c0 + H].set(
            params[f"enc_w{i}"].astype(f32) * normalize_factor)
        b_enc = b_enc.at[c0:c0 + H].set(params[f"enc_b{i}"].astype(f32))
        g_enc = g_enc.at[c0:c0 + H].set(params[f"ln_g{i}"].astype(f32))
        be_enc = be_enc.at[c0:c0 + H].set(params[f"ln_b{i}"].astype(f32))
        p_enc = p_enc.at[c0:c0 + H, i].set(1.0 / H)
        q_enc = q_enc.at[i, c0:c0 + H].set(1.0)
        row += f
    vec_enc = jnp.stack([b_enc, g_enc, be_enc], axis=0)          # (3, KH_pad)

    # --- world_gather ---------------------------------------------------------
    w_g = jnp.zeros((KH_pad, H_pad), f32).at[:KH, :H].set(params["g_w"].astype(f32))
    vec_g = jnp.stack([
        jnp.zeros((H_pad,), f32).at[:H].set(params["g_b"].astype(f32)),
        jnp.zeros((H_pad,), f32).at[:H].set(params["g_ln_g"].astype(f32)),
        jnp.zeros((H_pad,), f32).at[:H].set(params["g_ln_b"].astype(f32)),
        jnp.zeros((H_pad,), f32).at[:H].set(1.0),                # real-lane mask
    ], axis=0)                                                   # (4, H_pad)

    # --- critic + sub-actor first linears, fused side-by-side ----------------
    w_h1 = jnp.zeros((H_pad, HEAD_pad), f32)
    b_h1 = jnp.zeros((1, HEAD_pad), f32)
    w_h1 = w_h1.at[:H, 0:H].set(params["c_w1"].astype(f32))
    b_h1 = b_h1.at[0, 0:H].set(params["c_b1"].astype(f32))
    for j in range(len(action_shape)):
        c0 = (1 + j) * H
        w_h1 = w_h1.at[:H, c0:c0 + H].set(params[f"a_w1_{j}"].astype(f32))
        b_h1 = b_h1.at[0, c0:c0 + H].set(params[f"a_b1_{j}"].astype(f32))

    # --- second linears as one block-diagonal weight; tanh mask on actor lanes
    w_h2 = jnp.zeros((HEAD_pad, OUT_pad), f32)
    b_h2 = jnp.zeros((OUT_pad,), f32)
    tanh_mask = jnp.zeros((OUT_pad,), f32)
    w_h2 = w_h2.at[0:H, 0:1].set(params["c_w2"].astype(f32))
    b_h2 = b_h2.at[0].set(params["c_b2"].astype(f32)[0])
    col = 1
    for j, a in enumerate(action_shape):
        r0 = (1 + j) * H
        w_h2 = w_h2.at[r0:r0 + H, col:col + a].set(params[f"a_w2_{j}"].astype(f32))
        b_h2 = b_h2.at[col:col + a].set(params[f"a_b2_{j}"].astype(f32))
        if output_activation == "tanh":
            tanh_mask = tanh_mask.at[col:col + a].set(1.0)
        col += a
    vec_out = jnp.stack([b_h2, tanh_mask], axis=0)               # (2, OUT_pad)

    packed = dict(
        w_enc=w_enc.astype(bf16), p_enc=p_enc, q_enc=q_enc, vec_enc=vec_enc,
        w_g=w_g.astype(bf16), vec_g=vec_g,
        w_h1=w_h1.astype(bf16), b_h1=b_h1,
        w_h2=w_h2.astype(bf16), vec_out=vec_out)
    meta = dict(H=H, F_sum=F_sum, F_pad=F_pad, KH_pad=KH_pad, NK_pad=NK_pad,
                H_pad=H_pad, HEAD_pad=HEAD_pad, OUT_pad=OUT_pad, A_sum=A_sum)
    return packed, meta


# ----------------------------------------------------------------------------- batch tiling
def _choose_batch_tile(B, max_block_rows=512):
    """8-aligned row tile.  Targets >=2 grid steps whenever B permits (v7x has
    2 TensorCores) and trades padded-row waste against per-grid-step overhead
    (~0.35us, modeled as a few row-equivalents per step)."""
    target = min(max_block_rows, max(8, _round_up(-(-B // 2), 8)))
    best = None
    for tb in range(8, target + 1, 8):
        pad_rows = _round_up(B, tb)
        steps = pad_rows // tb
        cost = pad_rows + 16 * steps          # 16 row-equivalents per grid step
        if best is None or cost < best[0] or (cost == best[0] and tb > best[1]):
            best = (cost, tb, pad_rows)
    _, tb, pad_rows = best
    return tb, pad_rows


# ----------------------------------------------------------------------------- wrapper
def actor_critic_forward(inputs, packed, meta, *, max_block_rows=512,
                         approx_gelu=False):
    """inputs: list of (B, F_i) arrays (values of the ordered state dict).
    Returns (state_values (B,1), action_logits (B, A_sum))."""
    x_cat = jnp.concatenate([x.astype(jnp.float32) for x in inputs], axis=-1)
    B = x_cat.shape[0]
    F_pad, OUT_pad, A_sum = meta["F_pad"], meta["OUT_pad"], meta["A_sum"]

    TB, B_pad = _choose_batch_tile(B, max_block_rows)
    x_p = jnp.zeros((B_pad, F_pad), jnp.float32).at[:B, :x_cat.shape[1]].set(x_cat)

    kernel = _make_actor_critic_kernel(meta["H"], approx_gelu=approx_gelu)

    w_args = [packed["w_enc"], packed["p_enc"], packed["q_enc"], packed["vec_enc"],
              packed["w_g"], packed["vec_g"], packed["w_h1"], packed["b_h1"],
              packed["w_h2"], packed["vec_out"]]

    def resident(arr):  # weights/param slabs: same block every grid step
        return pl.BlockSpec(arr.shape, lambda i: (0, 0))

    # --- right-sized VMEM budget (weights double-buffered by the pipeline,
    # double-buffered I/O tiles, f32 intermediates, 2x headroom, 8 MiB floor) --
    weight_bytes = sum(int(a.size) * a.dtype.itemsize for a in w_args)
    io_bytes = 2 * TB * (F_pad + OUT_pad) * 4
    interm_bytes = TB * (3 * meta["KH_pad"] + 2 * meta["NK_pad"]
                         + 2 * meta["H_pad"] + meta["HEAD_pad"] + OUT_pad) * 4
    vmem_limit = int(min(32 << 20,
                         max(8 << 20,
                             2 * (2 * weight_bytes + io_bytes + interm_bytes))))

    # --- advisory cost estimate for XLA scheduling ----------------------------
    flops = 2 * B_pad * (F_pad * meta["KH_pad"]
                         + 4 * meta["KH_pad"] * meta["NK_pad"]
                         + meta["KH_pad"] * meta["H_pad"]
                         + meta["H_pad"] * meta["HEAD_pad"]
                         + meta["HEAD_pad"] * OUT_pad)
    transcendentals = B_pad * (2 * meta["KH_pad"] + 2 * meta["H_pad"]
                               + meta["HEAD_pad"] + OUT_pad)
    bytes_accessed = int(x_p.size) * 4 + B_pad * OUT_pad * 4 + weight_bytes

    out = pl.pallas_call(
        kernel,
        out_shape=jax.ShapeDtypeStruct((B_pad, OUT_pad), jnp.float32),
        grid=(B_pad // TB,),
        in_specs=[pl.BlockSpec((TB, F_pad), lambda i: (i, 0))]
                 + [resident(a) for a in w_args],
        out_specs=pl.BlockSpec((TB, OUT_pad), lambda i: (i, 0)),
        compiler_params=pltpu.CompilerParams(
            dimension_semantics=("parallel",),
            vmem_limit_bytes=vmem_limit),
        cost_estimate=pl.CostEstimate(flops=int(flops),
                                      transcendentals=int(transcendentals),
                                      bytes_accessed=int(bytes_accessed)),
    )(x_p, *w_args)

    state_values = out[:B, 0:1]
    action_logits = out[:B, 1:1 + A_sum]
    return state_values, action_logits


# ----------------------------------------------------------------------------- init + reference
def init_params(key, feature_shape, action_shape, hidden_size):
    H = hidden_size
    params = {}

    def linear(k, fan_in, fan_out):
        k1, k2 = jax.random.split(k)
        bound = 1.0 / math.sqrt(fan_in)
        w = jax.random.uniform(k1, (fan_in, fan_out), jnp.float32, -bound, bound)
        b = jax.random.uniform(k2, (fan_out,), jnp.float32, -bound, bound)
        return w, b

    for i, f in enumerate(feature_shape):
        key, k1, k2, k3 = jax.random.split(key, 4)
        params[f"enc_w{i}"], params[f"enc_b{i}"] = linear(k1, f, H)
        params[f"ln_g{i}"] = 1.0 + 0.05 * jax.random.normal(k2, (H,), jnp.float32)
        params[f"ln_b{i}"] = 0.05 * jax.random.normal(k3, (H,), jnp.float32)
    key, k1, k2, k3 = jax.random.split(key, 4)
    params["g_w"], params["g_b"] = linear(k1, H * len(feature_shape), H)
    params["g_ln_g"] = 1.0 + 0.05 * jax.random.normal(k2, (H,), jnp.float32)
    params["g_ln_b"] = 0.05 * jax.random.normal(k3, (H,), jnp.float32)
    key, k1, k2 = jax.random.split(key, 3)
    params["c_w1"], params["c_b1"] = linear(k1, H, H)
    params["c_w2"], params["c_b2"] = linear(k2, H, 1)
    for j, a in enumerate(action_shape):
        key, k1, k2 = jax.random.split(key, 3)
        params[f"a_w1_{j}"], params[f"a_b1_{j}"] = linear(k1, H, H)
        params[f"a_w2_{j}"], params[f"a_b2_{j}"] = linear(k2, H, a)
    return params


def _gelu_exact(x):
    return 0.5 * x * (1.0 + lax.erf(x * (1.0 / math.sqrt(2.0))))


def _layernorm_ref(x, gamma, beta, eps=1e-5):
    mu = jnp.mean(x, axis=-1, keepdims=True)
    var = jnp.mean((x - mu) * (x - mu), axis=-1, keepdims=True)
    return (x - mu) * lax.rsqrt(var + eps) * gamma + beta


def reference_forward(inputs, params, feature_shape, action_shape, hidden_size,
                      normalize_factor=1.0):
    """Pure-JAX (f32, exact-GELU) mirror of ActorCritic('world').forward."""
    hiddens = []
    for i, x in enumerate(inputs):
        xn = x.astype(jnp.float32) * normalize_factor
        h = xn @ params[f"enc_w{i}"] + params[f"enc_b{i}"]
        h = _gelu_exact(h)
        hiddens.append(_layernorm_ref(h, params[f"ln_g{i}"], params[f"ln_b{i}"]))
    large = jnp.concatenate(hiddens, axis=-1)
    g = _gelu_exact(large @ params["g_w"] + params["g_b"])
    wr = _layernorm_ref(g, params["g_ln_g"], params["g_ln_b"])
    # critic
    c = _gelu_exact(wr @ params["c_w1"] + params["c_b1"])
    values = c @ params["c_w2"] + params["c_b2"]
    # subdivided actor (tanh output activation)
    outs = []
    for j, _ in enumerate(action_shape):
        hj = _gelu_exact(wr @ params[f"a_w1_{j}"] + params[f"a_b1_{j}"])
        outs.append(jnp.tanh(hj @ params[f"a_w2_{j}"] + params[f"a_b2_{j}"]))
    logits = jnp.concatenate(outs, axis=-1)
    return values, logits


# ----------------------------------------------------------------------------- main
if __name__ == "__main__":
    # TODO(synk): ScaleParameterizedNormal sampling / log_prob / entropy
    # (select_action, evaluate_actions) is not part of forward() and is left
    # to host-side JAX; only forward() is implemented as a kernel.
    feature_shape = [6, 10]       # per-key world feature dims
    action_shape = [3, 2]         # SubdividedActor per-sub-actor action sizes
    hidden_size = 32
    batch = 8
    normalize_factor = 0.5

    key = jax.random.PRNGKey(0)
    key, kx0, kx1, kp = jax.random.split(key, 4)
    inputs = [
        jax.random.normal(kx0, (batch, feature_shape[0]), jnp.float32),
        jax.random.normal(kx1, (batch, feature_shape[1]), jnp.float32),
    ]
    params = init_params(kp, feature_shape, action_shape, hidden_size)
    packed, meta = pack_params(params, feature_shape, action_shape, hidden_size,
                               normalize_factor=normalize_factor,
                               output_activation="tanh")

    values, logits = actor_critic_forward(inputs, packed, meta)
    values = jax.block_until_ready(values)
    logits = jax.block_until_ready(logits)

    ref_values, ref_logits = reference_forward(
        inputs, params, feature_shape, action_shape, hidden_size,
        normalize_factor=normalize_factor)

    assert values.shape == (batch, 1)
    assert logits.shape == (batch, sum(action_shape))
    # Tolerance loosened vs the exact-f32 reference because the kernel feeds
    # bf16 operands to the MXU (f32 accumulation); wiring errors would show as
    # O(1) mismatches and are still caught.
    assert jnp.allclose(values, ref_values, atol=1e-1, rtol=1e-1), "values mismatch"
    assert jnp.allclose(logits, ref_logits, atol=1e-1, rtol=1e-1), "logits mismatch"

    print("KERNEL_OK")
</pallas_src>

<mosaic_0001>
module attributes {stable_mosaic.version = 11 : i64} {
  func.func @kernel(%arg0: i32, %arg1: memref<8x128xf32, #tpu.memory_space<vmem>>, %arg2: memref<128x128xbf16, #tpu.memory_space<vmem>>, %arg3: memref<128x128xf32, #tpu.memory_space<vmem>>, %arg4: memref<128x128xf32, #tpu.memory_space<vmem>>, %arg5: memref<3x128xf32, #tpu.memory_space<vmem>>, %arg6: memref<128x128xbf16, #tpu.memory_space<vmem>>, %arg7: memref<4x128xf32, #tpu.memory_space<vmem>>, %arg8: memref<128x128xbf16, #tpu.memory_space<vmem>>, %arg9: memref<1x128xf32, #tpu.memory_space<vmem>>, %arg10: memref<128x128xbf16, #tpu.memory_space<vmem>>, %arg11: memref<2x128xf32, #tpu.memory_space<vmem>>, %arg12: memref<8x128xf32, #tpu.memory_space<vmem>>) attributes {dimension_semantics = [#tpu.dimension_semantics<parallel>], iteration_bounds = array<i64: 1>, scalar_prefetch = 0 : i64, scratch_operands = 0 : i64, tpu.core_type = #tpu.core_type<tc>, window_params = [{transform_indices = @transform_0, window_bounds = array<i64: 8, 128>}, {pipeline_mode = #tpu.pipeline_mode<synchronous>, transform_indices = @transform_1, window_bounds = array<i64: 128, 128>}, {pipeline_mode = #tpu.pipeline_mode<synchronous>, transform_indices = @transform_2, window_bounds = array<i64: 128, 128>}, {pipeline_mode = #tpu.pipeline_mode<synchronous>, transform_indices = @transform_3, window_bounds = array<i64: 128, 128>}, {pipeline_mode = #tpu.pipeline_mode<synchronous>, transform_indices = @transform_4, window_bounds = array<i64: 3, 128>}, {pipeline_mode = #tpu.pipeline_mode<synchronous>, transform_indices = @transform_5, window_bounds = array<i64: 128, 128>}, {pipeline_mode = #tpu.pipeline_mode<synchronous>, transform_indices = @transform_6, window_bounds = array<i64: 4, 128>}, {pipeline_mode = #tpu.pipeline_mode<synchronous>, transform_indices = @transform_7, window_bounds = array<i64: 128, 128>}, {pipeline_mode = #tpu.pipeline_mode<synchronous>, transform_indices = @transform_8, window_bounds = array<i64: 1, 128>}, {pipeline_mode = #tpu.pipeline_mode<synchronous>, transform_indices = @transform_9, window_bounds = array<i64: 128, 128>}, {pipeline_mode = #tpu.pipeline_mode<synchronous>, transform_indices = @transform_10, window_bounds = array<i64: 2, 128>}, {transform_indices = @transform_11, window_bounds = array<i64: 8, 128>}]} {
    %c0 = arith.constant 0 : index
    %c0_0 = arith.constant 0 : index
    %0 = vector.load %arg1[%c0, %c0_0] : memref<8x128xf32, #tpu.memory_space<vmem>>, vector<8x128xf32>
    %c0_1 = arith.constant 0 : index
    %c0_2 = arith.constant 0 : index
    %1 = vector.load %arg5[%c0_1, %c0_2] : memref<3x128xf32, #tpu.memory_space<vmem>>, vector<3x128xf32>
    %2 = arith.truncf %0 : vector<8x128xf32> to vector<8x128xbf16>
    %c0_3 = arith.constant 0 : index
    %c0_4 = arith.constant 0 : index
    %3 = vector.load %arg2[%c0_3, %c0_4] : memref<128x128xbf16, #tpu.memory_space<vmem>>, vector<128x128xbf16>
    %cst = arith.constant dense<0.000000e+00> : vector<8x128xf32>
    %4 = tpu.matmul %2, %3, %cst {dimension_numbers = #tpu.dot_dimension_numbers<[1], [0], [0], [1], [0, 0, 1, 1], [], []>} : vector<8x128xbf16>, vector<128x128xbf16>, vector<8x128xf32> -> vector<8x128xf32>
    %5 = vector.extract_strided_slice %1 {offsets = [0, 0], sizes = [1, 128], strides = [1, 1]} : vector<3x128xf32> to vector<1x128xf32>
    %6 = vector.broadcast %5 : vector<1x128xf32> to vector<8x128xf32>
    %7 = arith.addf %4, %6 : vector<8x128xf32>
    %cst_5 = arith.constant 5.000000e-01 : f32
    %8 = vector.broadcast %cst_5 : f32 to vector<8x128xf32>
    %9 = arith.mulf %8, %7 : vector<8x128xf32>
    %cst_6 = arith.constant 0.707106769 : f32
    %10 = vector.broadcast %cst_6 : f32 to vector<8x128xf32>
    %11 = arith.mulf %7, %10 : vector<8x128xf32>
    %12 = math.erf %11 : vector<8x128xf32>
    %cst_7 = arith.constant 1.000000e+00 : f32
    %13 = vector.broadcast %cst_7 : f32 to vector<8x128xf32>
    %14 = arith.addf %13, %12 : vector<8x128xf32>
    %15 = arith.mulf %9, %14 : vector<8x128xf32>
    %c0_8 = arith.constant 0 : index
    %c0_9 = arith.constant 0 : index
    %16 = vector.load %arg3[%c0_8, %c0_9] : memref<128x128xf32, #tpu.memory_space<vmem>>, vector<128x128xf32>
    %c0_10 = arith.constant 0 : index
    %c0_11 = arith.constant 0 : index
    %17 = vector.load %arg4[%c0_10, %c0_11] : memref<128x128xf32, #tpu.memory_space<vmem>>, vector<128x128xf32>
    %cst_12 = arith.constant dense<0.000000e+00> : vector<8x128xf32>
    %18 = tpu.matmul %15, %16, %cst_12 {dimension_numbers = #tpu.dot_dimension_numbers<[1], [0], [0], [1], [0, 0, 1, 1], [], []>} : vector<8x128xf32>, vector<128x128xf32>, vector<8x128xf32> -> vector<8x128xf32>
    %cst_13 = arith.constant dense<0.000000e+00> : vector<8x128xf32>
    %19 = tpu.matmul %18, %17, %cst_13 {dimension_numbers = #tpu.dot_dimension_numbers<[1], [0], [0], [1], [0, 0, 1, 1], [], []>} : vector<8x128xf32>, vector<128x128xf32>, vector<8x128xf32> -> vector<8x128xf32>
    %20 = arith.subf %15, %19 : vector<8x128xf32>
    %21 = arith.mulf %20, %20 : vector<8x128xf32>
    %cst_14 = arith.constant dense<0.000000e+00> : vector<8x128xf32>
    %22 = tpu.matmul %21, %16, %cst_14 {dimension_numbers = #tpu.dot_dimension_numbers<[1], [0], [0], [1], [0, 0, 1, 1], [], []>} : vector<8x128xf32>, vector<128x128xf32>, vector<8x128xf32> -> vector<8x128xf32>
    %cst_15 = arith.constant dense<0.000000e+00> : vector<8x128xf32>
    %23 = tpu.matmul %22, %17, %cst_15 {dimension_numbers = #tpu.dot_dimension_numbers<[1], [0], [0], [1], [0, 0, 1, 1], [], []>} : vector<8x128xf32>, vector<128x128xf32>, vector<8x128xf32> -> vector<8x128xf32>
    %cst_16 = arith.constant 9.99999974E-6 : f32
    %24 = vector.broadcast %cst_16 : f32 to vector<8x128xf32>
    %25 = arith.addf %23, %24 : vector<8x128xf32>
    %26 = math.rsqrt %25 : vector<8x128xf32>
    %27 = arith.mulf %20, %26 : vector<8x128xf32>
    %28 = vector.extract_strided_slice %1 {offsets = [1, 0], sizes = [1, 128], strides = [1, 1]} : vector<3x128xf32> to vector<1x128xf32>
    %29 = vector.broadcast %28 : vector<1x128xf32> to vector<8x128xf32>
    %30 = arith.mulf %27, %29 : vector<8x128xf32>
    %31 = vector.extract_strided_slice %1 {offsets = [2, 0], sizes = [1, 128], strides = [1, 1]} : vector<3x128xf32> to vector<1x128xf32>
    %32 = vector.broadcast %31 : vector<1x128xf32> to vector<8x128xf32>
    %33 = arith.addf %30, %32 : vector<8x128xf32>
    %c0_17 = arith.constant 0 : index
    %c0_18 = arith.constant 0 : index
    %34 = vector.load %arg7[%c0_17, %c0_18] : memref<4x128xf32, #tpu.memory_space<vmem>>, vector<4x128xf32>
    %35 = arith.truncf %33 : vector<8x128xf32> to vector<8x128xbf16>
    %c0_19 = arith.constant 0 : index
    %c0_20 = arith.constant 0 : index
    %36 = vector.load %arg6[%c0_19, %c0_20] : memref<128x128xbf16, #tpu.memory_space<vmem>>, vector<128x128xbf16>
    %cst_21 = arith.constant dense<0.000000e+00> : vector<8x128xf32>
    %37 = tpu.matmul %35, %36, %cst_21 {dimension_numbers = #tpu.dot_dimension_numbers<[1], [0], [0], [1], [0, 0, 1, 1], [], []>} : vector<8x128xbf16>, vector<128x128xbf16>, vector<8x128xf32> -> vector<8x128xf32>
    %38 = vector.extract_strided_slice %34 {offsets = [0, 0], sizes = [1, 128], strides = [1, 1]} : vector<4x128xf32> to vector<1x128xf32>
    %39 = vector.broadcast %38 : vector<1x128xf32> to vector<8x128xf32>
    %40 = arith.addf %37, %39 : vector<8x128xf32>
    %cst_22 = arith.constant 5.000000e-01 : f32
    %41 = vector.broadcast %cst_22 : f32 to vector<8x128xf32>
    %42 = arith.mulf %41, %40 : vector<8x128xf32>
    %cst_23 = arith.constant 0.707106769 : f32
    %43 = vector.broadcast %cst_23 : f32 to vector<8x128xf32>
    %44 = arith.mulf %40, %43 : vector<8x128xf32>
    %45 = math.erf %44 : vector<8x128xf32>
    %cst_24 = arith.constant 1.000000e+00 : f32
    %46 = vector.broadcast %cst_24 : f32 to vector<8x128xf32>
    %47 = arith.addf %46, %45 : vector<8x128xf32>
    %48 = arith.mulf %42, %47 : vector<8x128xf32>
    %cst_25 = arith.constant dense<0.000000e+00> : vector<8xf32>
    %49 = vector.multi_reduction <add>, %48, %cst_25 [1] : vector<8x128xf32> to vector<8xf32>
    %50 = vector.shape_cast %49 : vector<8xf32> to vector<8x1xf32>
    %cst_26 = arith.constant 3.125000e-02 : f32
    %51 = vector.broadcast %cst_26 : f32 to vector<8x1xf32>
    %52 = arith.mulf %50, %51 : vector<8x1xf32>
    %53 = vector.broadcast %52 : vector<8x1xf32> to vector<8x128xf32>
    %54 = arith.subf %48, %53 : vector<8x128xf32>
    %55 = vector.extract_strided_slice %34 {offsets = [3, 0], sizes = [1, 128], strides = [1, 1]} : vector<4x128xf32> to vector<1x128xf32>
    %56 = vector.broadcast %55 : vector<1x128xf32> to vector<8x128xf32>
    %57 = arith.mulf %54, %56 : vector<8x128xf32>
    %58 = arith.mulf %57, %57 : vector<8x128xf32>
    %cst_27 = arith.constant dense<0.000000e+00> : vector<8xf32>
    %59 = vector.multi_reduction <add>, %58, %cst_27 [1] : vector<8x128xf32> to vector<8xf32>
    %60 = vector.shape_cast %59 : vector<8xf32> to vector<8x1xf32>
    %cst_28 = arith.constant 3.125000e-02 : f32
    %61 = vector.broadcast %cst_28 : f32 to vector<8x1xf32>
    %62 = arith.mulf %60, %61 : vector<8x1xf32>
    %cst_29 = arith.constant 9.99999974E-6 : f32
    %63 = vector.broadcast %cst_29 : f32 to vector<8x1xf32>
    %64 = arith.addf %62, %63 : vector<8x1xf32>
    %65 = math.rsqrt %64 : vector<8x1xf32>
    %66 = vector.broadcast %65 : vector<8x1xf32> to vector<8x128xf32>
    %67 = arith.mulf %57, %66 : vector<8x128xf32>
    %68 = vector.extract_strided_slice %34 {offsets = [1, 0], sizes = [1, 128], strides = [1, 1]} : vector<4x128xf32> to vector<1x128xf32>
    %69 = vector.broadcast %68 : vector<1x128xf32> to vector<8x128xf32>
    %70 = arith.mulf %67, %69 : vector<8x128xf32>
    %71 = vector.extract_strided_slice %34 {offsets = [2, 0], sizes = [1, 128], strides = [1, 1]} : vector<4x128xf32> to vector<1x128xf32>
    %72 = vector.broadcast %71 : vector<1x128xf32> to vector<8x128xf32>
    %73 = arith.addf %70, %72 : vector<8x128xf32>
    %74 = arith.truncf %73 : vector<8x128xf32> to vector<8x128xbf16>
    %c0_30 = arith.constant 0 : index
    %c0_31 = arith.constant 0 : index
    %75 = vector.load %arg8[%c0_30, %c0_31] : memref<128x128xbf16, #tpu.memory_space<vmem>>, vector<128x128xbf16>
    %cst_32 = arith.constant dense<0.000000e+00> : vector<8x128xf32>
    %76 = tpu.matmul %74, %75, %cst_32 {dimension_numbers = #tpu.dot_dimension_numbers<[1], [0], [0], [1], [0, 0, 1, 1], [], []>} : vector<8x128xbf16>, vector<128x128xbf16>, vector<8x128xf32> -> vector<8x128xf32>
    %c0_33 = arith.constant 0 : index
    %c0_34 = arith.constant 0 : index
    %77 = vector.load %arg9[%c0_33, %c0_34] : memref<1x128xf32, #tpu.memory_space<vmem>>, vector<1x128xf32>
    %78 = vector.broadcast %77 : vector<1x128xf32> to vector<8x128xf32>
    %79 = arith.addf %76, %78 : vector<8x128xf32>
    %cst_35 = arith.constant 5.000000e-01 : f32
    %80 = vector.broadcast %cst_35 : f32 to vector<8x128xf32>
    %81 = arith.mulf %80, %79 : vector<8x128xf32>
    %cst_36 = arith.constant 0.707106769 : f32
    %82 = vector.broadcast %cst_36 : f32 to vector<8x128xf32>
    %83 = arith.mulf %79, %82 : vector<8x128xf32>
    %84 = math.erf %83 : vector<8x128xf32>
    %cst_37 = arith.constant 1.000000e+00 : f32
    %85 = vector.broadcast %cst_37 : f32 to vector<8x128xf32>
    %86 = arith.addf %85, %84 : vector<8x128xf32>
    %87 = arith.mulf %81, %86 : vector<8x128xf32>
    %c0_38 = arith.constant 0 : index
    %c0_39 = arith.constant 0 : index
    %88 = vector.load %arg11[%c0_38, %c0_39] : memref<2x128xf32, #tpu.memory_space<vmem>>, vector<2x128xf32>
    %89 = arith.truncf %87 : vector<8x128xf32> to vector<8x128xbf16>
    %c0_40 = arith.constant 0 : index
    %c0_41 = arith.constant 0 : index
    %90 = vector.load %arg10[%c0_40, %c0_41] : memref<128x128xbf16, #tpu.memory_space<vmem>>, vector<128x128xbf16>
    %cst_42 = arith.constant dense<0.000000e+00> : vector<8x128xf32>
    %91 = tpu.matmul %89, %90, %cst_42 {dimension_numbers = #tpu.dot_dimension_numbers<[1], [0], [0], [1], [0, 0, 1, 1], [], []>} : vector<8x128xbf16>, vector<128x128xbf16>, vector<8x128xf32> -> vector<8x128xf32>
    %92 = vector.extract_strided_slice %88 {offsets = [0, 0], sizes = [1, 128], strides = [1, 1]} : vector<2x128xf32> to vector<1x128xf32>
    %93 = vector.broadcast %92 : vector<1x128xf32> to vector<8x128xf32>
    %94 = arith.addf %91, %93 : vector<8x128xf32>
    %95 = vector.extract_strided_slice %88 {offsets = [1, 0], sizes = [1, 128], strides = [1, 1]} : vector<2x128xf32> to vector<1x128xf32>
    %cst_43 = arith.constant 5.000000e-01 : f32
    %96 = vector.broadcast %cst_43 : f32 to vector<1x128xf32>
    %97 = arith.cmpf ogt, %95, %96 : vector<1x128xf32>
    %98 = math.tanh %94 : vector<8x128xf32>
    %99 = vector.shape_cast %97 : vector<1x128xi1> to vector<1x128xi1>
    %100 = vector.broadcast %99 : vector<1x128xi1> to vector<8x128xi1>
    %101 = arith.select %100, %98, %94 : vector<8x128xi1>, vector<8x128xf32>
    %c0_44 = arith.constant 0 : index
    %c0_45 = arith.constant 0 : index
    %102 = vector.load %arg12[%c0_44, %c0_45] : memref<8x128xf32, #tpu.memory_space<vmem>>, vector<8x128xf32>
    tpu.vector_store %arg12[%c0_44, %c0_45], %101 {strides = array<i32>} : memref<8x128xf32, #tpu.memory_space<vmem>>, vector<8x128xf32>,
    return
  }
  func.func @transform_0(%arg0: i32) -> (i32, i32) {
    %c0_i32 = arith.constant 0 : i32
    %c0_i32_0 = arith.constant 0 : i32
    return %arg0, %c0_i32 : i32, i32
  }
  func.func @transform_1(%arg0: i32) -> (i32, i32) {
    %c0_i32 = arith.constant 0 : i32
    %c0_i32_0 = arith.constant 0 : i32
    %c0_i32_1 = arith.constant 0 : i32
    return %c0_i32, %c0_i32_0 : i32, i32
  }
  func.func @transform_2(%arg0: i32) -> (i32, i32) {
    %c0_i32 = arith.constant 0 : i32
    %c0_i32_0 = arith.constant 0 : i32
    %c0_i32_1 = arith.constant 0 : i32
    return %c0_i32, %c0_i32_0 : i32, i32
  }
  func.func @transform_3(%arg0: i32) -> (i32, i32) {
    %c0_i32 = arith.constant 0 : i32
    %c0_i32_0 = arith.constant 0 : i32
    %c0_i32_1 = arith.constant 0 : i32
    return %c0_i32, %c0_i32_0 : i32, i32
  }
  func.func @transform_4(%arg0: i32) -> (i32, i32) {
    %c0_i32 = arith.constant 0 : i32
    %c0_i32_0 = arith.constant 0 : i32
    %c0_i32_1 = arith.constant 0 : i32
    return %c0_i32, %c0_i32_0 : i32, i32
  }
  func.func @transform_5(%arg0: i32) -> (i32, i32) {
    %c0_i32 = arith.constant 0 : i32
    %c0_i32_0 = arith.constant 0 : i32
    %c0_i32_1 = arith.constant 0 : i32
    return %c0_i32, %c0_i32_0 : i32, i32
  }
  func.func @transform_6(%arg0: i32) -> (i32, i32) {
    %c0_i32 = arith.constant 0 : i32
    %c0_i32_0 = arith.constant 0 : i32
    %c0_i32_1 = arith.constant 0 : i32
    return %c0_i32, %c0_i32_0 : i32, i32
  }
  func.func @transform_7(%arg0: i32) -> (i32, i32) {
    %c0_i32 = arith.constant 0 : i32
    %c0_i32_0 = arith.constant 0 : i32
    %c0_i32_1 = arith.constant 0 : i32
    return %c0_i32, %c0_i32_0 : i32, i32
  }
  func.func @transform_8(%arg0: i32) -> (i32, i32) {
    %c0_i32 = arith.constant 0 : i32
    %c0_i32_0 = arith.constant 0 : i32
    %c0_i32_1 = arith.constant 0 : i32
    return %c0_i32, %c0_i32_0 : i32, i32
  }
  func.func @transform_9(%arg0: i32) -> (i32, i32) {
    %c0_i32 = arith.constant 0 : i32
    %c0_i32_0 = arith.constant 0 : i32
    %c0_i32_1 = arith.constant 0 : i32
    return %c0_i32, %c0_i32_0 : i32, i32
  }
  func.func @transform_10(%arg0: i32) -> (i32, i32) {
    %c0_i32 = arith.constant 0 : i32
    %c0_i32_0 = arith.constant 0 : i32
    %c0_i32_1 = arith.constant 0 : i32
    return %c0_i32, %c0_i32_0 : i32, i32
  }
  func.func @transform_11(%arg0: i32) -> (i32, i32) {
    %c0_i32 = arith.constant 0 : i32
    %c0_i32_0 = arith.constant 0 : i32
    return %arg0, %c0_i32 : i32, i32
  }
}

</mosaic_0001>

<bundles_post_ra>
// kernel: tpu_custom_call.1
= control target key start
LH: loop header
LB: loop body
LE: loop exit
PB: predicated region body
PF: predicated region fallthrough
CT: control target
= control target key end

     0   :  { %16 = vsyncpa [#allocation3], 0  ;;  %s1951_s0 = inlined_call_operand.hbm [shape: f32[8,128], index: 0, kind: input, shape index: {}]   ;;  %s1952_s1 = inlined_call_operand.hbm [shape: bf16[128,128], index: 1, kind: input, shape index: {}]   ;;  %s1953_s2 = inlined_call_operand.hbm [shape: f32[128,128], index: 2, kind: input, shape index: {}]   ;;  %s1954_s3 = inlined_call_operand.hbm [shape: f32[128,128], index: 3, kind: input, shape index: {}]   ;;  %s1955_s4 = inlined_call_operand.vmem [shape: f32[3,128], index: 4, kind: input, shape index: {}]   ;;  %s1956_s5 = inlined_call_operand.hbm [shape: bf16[128,128], index: 5, kind: input, shape index: {}]   ;;  %s1957_s6 = inlined_call_operand.vmem [shape: f32[4,128], index: 6, kind: input, shape index: {}]   ;;  %s1958_s7 = inlined_call_operand.hbm [shape: bf16[128,128], index: 7, kind: input, shape index: {}]   ;;  %s1959_s8 = inlined_call_operand.vmem [shape: f32[1,128], index: 8, kind: input, shape index: {}]   ;;  %s1960_s9 = inlined_call_operand.hbm [shape: bf16[128,128], index: 9, kind: input, shape index: {}]   ;;  %s1961_s10 = inlined_call_operand.vmem [shape: f32[2,128], index: 10, kind: input, shape index: {}]   ;;  %s1962_s11 = inlined_call_operand.hbm [shape: f32[8,128], index: 11, kind: output, shape index: {}]  }
   0x1   :  { %17 = vsyncpa [#allocation6], 0 }
   0x2   :  { %18 = vsyncpa [#allocation9], 0 }
   0x3   :  { %19 = vsyncpa [#allocation12], 0 }
   0x4   :  { %20 = vsyncpa [#allocation4], 0  ;;  %s1557_s17 = smov [#allocation5]  }
   0x5   :  { %s36_s18 = sshll.u32 %s1557_s17, 4  ;;  %s37_s18 = int_to_ptr.vmem [resolvable:$true] %s36_s18 }
   0x6   :  { %s1395_s19 = scalar_lea.vmem %s37_s18, 1024  ;;  %p1400_p1 = scmp.lt.s32.totalorder %s37_s18, %s37_s18 }
   0x7   :  { %p1396_p0 = scmp.ne.s32.totalorder %s37_s18, %s1395_s19  ;;  %p1401_p2 = scmp.lt.s32.totalorder %s1395_s19, %s1395_s19 }
   0x9   :  { %p1402_p3 = por %p1401_p2, %p1400_p1 }
   0xb   :  { %p1403_p4 = pnand %p1402_p3, %p1396_p0 }
   0xd   :  { %1406 = shalt.err (!%p1403_p4)
}
   0xe   :  { %s1558_s20 = smov 64   ;;  %s1559_s21 = smov 4  }
   0xf   :  { %42 = dma.hbm_to_vmem [thread:$0]  %s1952_s1, 1024, %s37_s18, [#allocation6], %s1558_s20, %s1558_s20, %s1559_s21  }
  0x10   :  { %s1560_s24 = smov [#allocation8]   ;;  %s1561_s26 = smov [#allocation11]  }
  0x11   :  { %s60_s25 = sshll.u32 %s1560_s24, 4  ;;  %s88_s27 = sshll.u32 %s1561_s26, 4  ;;  %s61_s25 = int_to_ptr.vmem [resolvable:$true] %s60_s25  ;;  %s89_s27 = int_to_ptr.vmem [resolvable:$true] %s88_s27 }
  0x12   :  { %s1415_s28 = scalar_lea.vmem %s61_s25, 2048  ;;  %p1420_p6 = scmp.lt.s32.totalorder %s61_s25, %s61_s25 }
  0x13   :  { %p1416_p5 = scmp.ne.s32.totalorder %s61_s25, %s1415_s28  ;;  %p1421_p7 = scmp.lt.s32.totalorder %s1415_s28, %s1415_s28 }
  0x15   :  { %p1422_p8 = por %p1421_p7, %p1420_p6 }
  0x17   :  { %p1423_p9 = pnand %p1422_p8, %p1416_p5 }
  0x19   :  { %1426 = shalt.err (!%p1423_p9)
}
  0x1a   :  { %s1562_s29 = smov 128   ;;  %s1563_s30 = smov 8  }
  0x1b   :  { %66 = dma.hbm_to_vmem [thread:$0]  %s1954_s3, 2048, %s61_s25, [#allocation9], %s1562_s29, %s1562_s29, %s1563_s30  }
  0x1c   :  { %s1435_s1 = scalar_lea.vmem %s89_s27, 1024  ;;  %p1440_p11 = scmp.lt.s32.totalorder %s89_s27, %s89_s27 }
  0x1d   :  { %p1436_p10 = scmp.ne.s32.totalorder %s89_s27, %s1435_s1  ;;  %p1441_p12 = scmp.lt.s32.totalorder %s1435_s1, %s1435_s1 }
  0x1f   :  { %p1442_p13 = por %p1441_p12, %p1440_p11 }
  0x21   :  { %p1443_p0 = pnand %p1442_p13, %p1436_p10 }
  0x23   :  { %1446 = shalt.err (!%p1443_p0)
}
  0x24   :  { %94 = dma.hbm_to_vmem [thread:$0]  %s1958_s7, 1024, %s89_s27, [#allocation12], %s1558_s20, %s1558_s20, %s1559_s21  }
  0x25   :  { %s1564_s16 = smov [#allocation2]   ;;  %s1565_s18 = smov [#allocation7]  }
  0x26   :  { %s27_s17 = sshll.u32 %s1564_s16, 4  ;;  %s48_s3 = sshll.u32 %s1565_s18, 4  ;;  %s28_s17 = int_to_ptr.vmem [resolvable:$true] %s27_s17  ;;  %s49_s3 = int_to_ptr.vmem [resolvable:$true] %s48_s3 }
  0x27   :  { %s1455_s19 = scalar_lea.vmem %s28_s17, 128  ;;  %p1460_p2 = scmp.lt.s32.totalorder %s28_s17, %s28_s17 }
  0x28   :  { %p1456_p1 = scmp.ne.s32.totalorder %s28_s17, %s1455_s19  ;;  %p1461_p3 = scmp.lt.s32.totalorder %s1455_s19, %s1455_s19 }
  0x2a   :  { %p1462_p4 = por %p1461_p3, %p1460_p2 }
  0x2c   :  { %p1463_p5 = pnand %p1462_p4, %p1456_p1 }
  0x2e   :  { %1466 = shalt.err (!%p1463_p5)
}
  0x2f   :  { %30 = dma.hbm_to_vmem [thread:$0]  %s1951_s0, 128, %s28_s17, [#allocation3]  }
  0x30   :  { %s1475_s24 = scalar_lea.vmem %s49_s3, 2048  ;;  %p1480_p7 = scmp.lt.s32.totalorder %s49_s3, %s49_s3 }
  0x31   :  { %p1476_p6 = scmp.ne.s32.totalorder %s49_s3, %s1475_s24  ;;  %p1481_p8 = scmp.lt.s32.totalorder %s1475_s24, %s1475_s24 }
  0x33   :  { %p1482_p9 = por %p1481_p8, %p1480_p7 }
  0x35   :  { %p1483_p10 = pnand %p1482_p9, %p1476_p6 }
  0x37   :  { %1486 = shalt.err (!%p1483_p10)
}
  0x38   :  { %54 = dma.hbm_to_vmem [thread:$0]  %s1953_s2, 2048, %s49_s3, [#allocation6], %s1562_s29, %s1562_s29, %s1563_s30  }
  0x39   :  { %s1566_s26 = smov [#allocation10]   ;;  %s1567_s28 = smov [#allocation13]  }
  0x3a   :  { %s74_s27 = sshll.u32 %s1566_s26, 4  ;;  %s102_s0 = sshll.u32 %s1567_s28, 4  ;;  %s75_s27 = int_to_ptr.vmem [resolvable:$true] %s74_s27  ;;  %s103_s0 = int_to_ptr.vmem [resolvable:$true] %s102_s0 }
  0x3b   :  { %s1495_s12 = scalar_lea.vmem %s75_s27, 1024  ;;  %p1500_p12 = scmp.lt.s32.totalorder %s75_s27, %s75_s27 }
  0x3c   :  { %p1496_p11 = scmp.ne.s32.totalorder %s75_s27, %s1495_s12  ;;  %p1501_p13 = scmp.lt.s32.totalorder %s1495_s12, %s1495_s12 }
  0x3e   :  { %p1502_p0 = por %p1501_p13, %p1500_p12 }
  0x40   :  { %p1503_p1 = pnand %p1502_p0, %p1496_p11 }
  0x42   :  { %1506 = shalt.err (!%p1503_p1)
}
  0x43   :  { %80 = dma.hbm_to_vmem [thread:$0]  %s1956_s5, 1024, %s75_s27, [#allocation9], %s1558_s20, %s1558_s20, %s1559_s21  }
  0x44   :  { %s1515_s2 = scalar_lea.vmem %s103_s0, 1024  ;;  %p1520_p3 = scmp.lt.s32.totalorder %s103_s0, %s103_s0 }
  0x45   :  { %p1516_p2 = scmp.ne.s32.totalorder %s103_s0, %s1515_s2  ;;  %p1521_p4 = scmp.lt.s32.totalorder %s1515_s2, %s1515_s2 }
  0x47   :  { %p1522_p5 = por %p1521_p4, %p1520_p3 }
  0x49   :  { %p1523_p6 = pnand %p1522_p5, %p1516_p2 }
  0x4b   :  { %1526 = shalt.err (!%p1523_p6)
}
  0x4c   :  { %108 = dma.hbm_to_vmem [thread:$0]  %s1960_s9, 1024, %s103_s0, [#allocation12], %s1558_s20, %s1558_s20, %s1559_s21  }
  0x4d   :  { %1547 = dma.done.wait [#allocation3], 128  }
  0x4e   :  { %1548 = vsyncadd [#allocation3], 4294967168 }
  0x4f   :  { %1549 = dma.done.wait [#allocation6], 3072  }
  0x50   :  { %1550 = vsyncadd [#allocation6], 4294964224 }
  0x51   :  { %1551 = dma.done.wait [#allocation9], 3072  }
  0x52   :  { %1552 = vsyncadd [#allocation9], 4294964224 }
  0x53   :  { %1553 = dma.done.wait [#allocation12], 2048  }
  0x54   :  { %1554 = vsyncadd [#allocation12], 4294965248  ;;  %v1568_v0 = vmov 0.0   ;;  %vm1569_vm0 = vmmov 0   ;;  %v1343_v1 = vld [vmem:[#allocation5 + $0x38] sm:$0xff]   ;;  %v1344_v2 = vld [vmem:[#allocation5 + $0x30] sm:$0xff]   ;;  %v152_v42 = vlaneseq }
  0x55   :  { %1108 = vmatprep.subr.bf16.mxu0 %v1568_v0  ;;  %1124 = vmatprep.mubr.msk.bf16.mxu0 %vm1569_vm0, %v1568_v0  ;;  %v1345_v3 = vld [vmem:[#allocation5 + $0x28] sm:$0xff]   ;;  %v1679_v4 = vld [vmem:[#allocation7 + $0x78] sm:$0xff]  ;;  %v1681_v5 = vld [vmem:[#allocation7 + $0x70] sm:$0xff] }
  0x56   :  { %1128 = vmatprep.subr.mxu1 %v1568_v0  ;;  %1160 = vmatprep.mubr.msk.f32.mxu1 %vm1569_vm0, %v1568_v0  ;;  %v1346_v6 = vld [vmem:[#allocation5 + $0x20] sm:$0xff]   ;;  %v1684_v7 = vld [vmem:[#allocation7 + $0x68] sm:$0xff]  ;;  %v1347_v9 = vld [vmem:[#allocation5 + $0x18] sm:$0xff]   ;;  %v1811_v43 = vshrl.u32 %v152_v42, 7 }
  0x57   :  { %1109 = vmatpush3.bf16.msra.mxu0 %v1343_v1  ;;  %1129 = vmatpush3.msra.mxu1 %v1679_v4  ;;  %v1687_v8 = vld [vmem:[#allocation7 + $0x60] sm:$0xff]  ;;  %v1348_v10 = vld [vmem:[#allocation5 + $0x10] sm:$0xff]   ;;  %v1349_v11 = vld [vmem:[#allocation5 + $0x8] sm:$0xff]  }
  0x58   :  { %1110 = vmatprep.subr.bf16.mxu0 %v1568_v0  ;;  %1130 = vmatprep.subr.mxu1 %v1568_v0  ;;  %v1350_v12 = vld [vmem:[#allocation5] sm:$0xff]   ;;  %v133_v13 = vld [vmem:[#allocation2] sm:$0xff]  ;;  %v1707_v16 = vld [vmem:[#allocation7 + $0x50] sm:$0xff]  ;;  %v1814_v44 = vsub.s32 0, %v1811_v43 }
  0x59   :  { %1131 = vmatpush3.msra.mxu1 %v1681_v5  ;;  %v135_v14 = vpack.c.bf16 %v133_v13, %v133_v13  ;;  %v1703_v15 = vld [vmem:[#allocation7 + $0x58] sm:$0xff]  ;;  %v1711_v17 = vld [vmem:[#allocation7 + $0x48] sm:$0xff]  ;;  %v1715_v18 = vld [vmem:[#allocation7 + $0x40] sm:$0xff] }
  0x5a   :  { %1132 = vmatprep.subr.mxu1 %v1568_v0  ;;  %v1718_v19 = vld [vmem:[#allocation7 + $0x38] sm:$0xff]  ;;  %v1721_v20 = vld [vmem:[#allocation7 + $0x30] sm:$0xff]  ;;  %v1725_v21 = vld [vmem:[#allocation7 + $0x28] sm:$0xff] }
  0x5b   :  { %1111 = vmatpush3.bf16.msra.mxu0 %v1344_v2  ;;  %1133 = vmatpush3.msra.mxu1 %v1684_v7  ;;  %v1729_v22 = vld [vmem:[#allocation7 + $0x20] sm:$0xff]  ;;  %v1733_v23 = vld [vmem:[#allocation7 + $0x18] sm:$0xff]  ;;  %v1737_v24 = vld [vmem:[#allocation7 + $0x10] sm:$0xff] }
  0x5c   :  { %1112 = vmatprep.subr.bf16.mxu0 %v1568_v0  ;;  %1134 = vmatprep.subr.mxu1 %v1568_v0  ;;  %v1741_v25 = vld [vmem:[#allocation7 + $0x8] sm:$0xff]  ;;  %v1745_v26 = vld [vmem:[#allocation7] sm:$0xff]  ;;  %v1750_v27 = vld [vmem:[#allocation8 + $0x78] sm:$0xff] }
  0x5d   :  { %1135 = vmatpush3.msra.mxu1 %v1687_v8  ;;  %v1752_v28 = vld [vmem:[#allocation8 + $0x70] sm:$0xff]  ;;  %v1757_v29 = vld [vmem:[#allocation8 + $0x68] sm:$0xff]  ;;  %v1761_v30 = vld [vmem:[#allocation8 + $0x60] sm:$0xff] }
  0x5e   :  { %1136 = vmatprep.subr.mxu1 %v1568_v0  ;;  %v1765_v31 = vld [vmem:[#allocation8 + $0x58] sm:$0xff]  ;;  %v1769_v32 = vld [vmem:[#allocation8 + $0x50] sm:$0xff]  ;;  %v1773_v33 = vld [vmem:[#allocation8 + $0x48] sm:$0xff] }
  0x5f   :  { %1113 = vmatpush3.bf16.msra.mxu0 %v1345_v3  ;;  %1137 = vmatpush3.msra.mxu1 %v1703_v15  ;;  %v1777_v34 = vld [vmem:[#allocation8 + $0x40] sm:$0xff]  ;;  %v1781_v35 = vld [vmem:[#allocation8 + $0x38] sm:$0xff]  ;;  %v1785_v36 = vld [vmem:[#allocation8 + $0x30] sm:$0xff] }
  0x60   :  { %1114 = vmatprep.subr.bf16.mxu0 %v1568_v0  ;;  %1138 = vmatprep.subr.mxu1 %v1568_v0  ;;  %v1789_v37 = vld [vmem:[#allocation8 + $0x28] sm:$0xff]  ;;  %v1793_v38 = vld [vmem:[#allocation8 + $0x20] sm:$0xff]  ;;  %v1797_v39 = vld [vmem:[#allocation8 + $0x18] sm:$0xff] }
  0x61   :  { %1139 = vmatpush3.msra.mxu1 %v1707_v16  ;;  %v1801_v40 = vld [vmem:[#allocation8 + $0x10] sm:$0xff]  ;;  %v1805_v41 = vld [vmem:[#allocation8 + $0x8] sm:$0xff]  ;;  %v1819_v45 = vld [vmem:[%s1955_s4] sm:$0x7] }
  0x62   :  { %1140 = vmatprep.subr.mxu1 %v1568_v0  ;;  %v155_v46 = vrot.slane %v1819_v45, %v1814_v44  ;;  %v265_v57 = vld [vmem:[#allocation8] sm:$0xff]  ;;  %v1351_v1 = vld [vmem:[#allocation10 + $0x38] sm:$0xff]   ;;  %v1352_v2 = vld [vmem:[#allocation10 + $0x30] sm:$0xff]  }
  0x63   :  { %1115 = vmatpush3.bf16.msra.mxu0 %v1346_v6  ;;  %1141 = vmatpush3.msra.mxu1 %v1711_v17  ;;  %v1354_v6 = vld [vmem:[#allocation10 + $0x20] sm:$0xff]  }
  0x64   :  { %1116 = vmatprep.subr.bf16.mxu0 %v1568_v0  ;;  %1142 = vmatprep.subr.mxu1 %v1568_v0 }
  0x65   :  { %1143 = vmatpush3.msra.mxu1 %v1715_v18 }
  0x66   :  { %1144 = vmatprep.subr.mxu1 %v1568_v0 }
  0x67   :  { %1117 = vmatpush3.bf16.msra.mxu0 %v1347_v9  ;;  %1145 = vmatpush3.msra.mxu1 %v1718_v19  ;;  %v1357_v9 = vld [vmem:[#allocation10 + $0x8] sm:$0xff]  }
  0x68   :  { %1118 = vmatprep.subr.bf16.mxu0 %v1568_v0  ;;  %1146 = vmatprep.subr.mxu1 %v1568_v0 }
  0x69   :  { %1147 = vmatpush3.msra.mxu1 %v1721_v20 }
  0x6a   :  { %1148 = vmatprep.subr.mxu1 %v1568_v0 }
  0x6b   :  { %1119 = vmatpush3.bf16.msra.mxu0 %v1348_v10  ;;  %1149 = vmatpush3.msra.mxu1 %v1725_v21  ;;  %v1358_v10 = vld [vmem:[#allocation10] sm:$0xff]  }
  0x6c   :  { %1120 = vmatprep.subr.bf16.mxu0 %v1568_v0  ;;  %1150 = vmatprep.subr.mxu1 %v1568_v0 }
  0x6d   :  { %1151 = vmatpush3.msra.mxu1 %v1729_v22 }
  0x6e   :  { %1152 = vmatprep.subr.mxu1 %v1568_v0 }
  0x6f   :  { %1121 = vmatpush3.bf16.msra.mxu0 %v1349_v11  ;;  %1153 = vmatpush3.msra.mxu1 %v1733_v23 }
  0x70   :  { %1122 = vmatprep.subr.bf16.mxu0 %v1568_v0  ;;  %1154 = vmatprep.subr.mxu1 %v1568_v0 }
  0x71   :  { %1155 = vmatpush3.msra.mxu1 %v1737_v24 }
  0x72   :  { %1156 = vmatprep.subr.mxu1 %v1568_v0 }
  0x73   :  { %1123 = vmatpush3.bf16.msra.mxu0 %v1350_v12  ;;  %1157 = vmatpush3.msra.mxu1 %v1741_v25 }
  0x74   :  { %1163 = vmatprep.subr.mxu0 %v1568_v0  ;;  %1158 = vmatprep.subr.mxu1 %v1568_v0 }
  0x75   :  { %1159 = vmatpush3.msra.mxu1 %v1745_v26 }
  0x76   :  { %1125 = vmatmul.mubr.bf16.vlgmr.msra.gmra.mxu0 %v135_v14  ;;  %1198 = vmatprep.subr.mxu1 %v1568_v0  ;;  %v1908_v14 = vsub.s32 1, %v1811_v43 }
  0x77   :  { %1195 = vmatprep.mubr.msk.f32.mxu0 %vm1569_vm0, %v1568_v0  ;;  %1164 = vmatpush3.msra.mxu0 %v1750_v27 }
  0x78   :  { %1165 = vmatprep.subr.mxu0 %v1568_v0 }
  0x79   :  { %1166 = vmatpush3.msra.mxu0 %v1752_v28 }
  0x7a   :  { %1167 = vmatprep.subr.mxu0 %v1568_v0 }
  0x7b   :  { %1168 = vmatpush3.msra.mxu0 %v1757_v29 }
  0x7c   :  { %1169 = vmatprep.subr.mxu0 %v1568_v0 }
  0x7d   :  { %1170 = vmatpush3.msra.mxu0 %v1761_v30 }
  0x7e   :  { %1171 = vmatprep.subr.mxu0 %v1568_v0 }
  0x7f   :  { %1172 = vmatpush3.msra.mxu0 %v1765_v31 }
  0x80   :  { %1173 = vmatprep.subr.mxu0 %v1568_v0 }
  0x81   :  { %1174 = vmatpush3.msra.mxu0 %v1769_v32 }
  0x82   :  { %1175 = vmatprep.subr.mxu0 %v1568_v0 }
  0x83   :  { %1176 = vmatpush3.msra.mxu0 %v1773_v33 }
  0x84   :  { %1177 = vmatprep.subr.mxu0 %v1568_v0 }
  0x85   :  { %1178 = vmatpush3.msra.mxu0 %v1777_v34 }
  0x86   :  { %1179 = vmatprep.subr.mxu0 %v1568_v0 }
  0x87   :  { %1180 = vmatpush3.msra.mxu0 %v1781_v35 }
  0x88   :  { %1181 = vmatprep.subr.mxu0 %v1568_v0 }
  0x89   :  { %1182 = vmatpush3.msra.mxu0 %v1785_v36 }
  0x8a   :  { %1183 = vmatprep.subr.mxu0 %v1568_v0 }
  0x8b   :  { %1184 = vmatpush3.msra.mxu0 %v1789_v37 }
  0x8c   :  { %1185 = vmatprep.subr.mxu0 %v1568_v0 }
  0x8d   :  { %1186 = vmatpush3.msra.mxu0 %v1793_v38 }
  0x8e   :  { %1187 = vmatprep.subr.mxu0 %v1568_v0 }
  0x8f   :  { %1188 = vmatpush3.msra.mxu0 %v1797_v39 }
  0x90   :  { %1189 = vmatprep.subr.mxu0 %v1568_v0 }
  0x91   :  { %1190 = vmatpush3.msra.mxu0 %v1801_v40 }
  0x92   :  { %1191 = vmatprep.subr.mxu0 %v1568_v0 }
  0x93   :  { %1192 = vmatpush3.msra.mxu0 %v1805_v41 }
  0x94   :  { %1193 = vmatprep.subr.mxu0 %v1568_v0 }
  0x95   :  { %1194 = vmatpush3.msra.mxu0 %v265_v57 }
  0x96   :  { %1233 = vmatprep.subr.mxu0 %v1568_v0 }
 0x136   :  { %v238_v47 = vpop.f32.mrf.mxu0 }
 0x137   :  { %v239_v48 = vadd.f32 %v238_v47, %v155_v46  ;;  %v1361_v46 = vld [vmem:[#allocation11 + $0x28] sm:$0xff]   ;;  %v1362_v47 = vld [vmem:[#allocation11 + $0x20] sm:$0xff]  }
 0x138   :  { %v1126_v49 = vpop.f32.mrf.mxu0 }
 0x139   :  { %v245_v50 = vmul.f32 0.70710677, %v239_v48  ;;  %v244_v54 = vmul.f32 0.5, %v239_v48  ;;  %v1363_v48 = vld [vmem:[#allocation11 + $0x18] sm:$0xff]   ;;  %v1364_v49 = vld [vmem:[#allocation11 + $0x10] sm:$0xff]  }
 0x13a   :  { %v241_v51 = vpop.f32.mrf.mxu0 }
 0x13b   :  { %1375 = verf.f32 %v245_v50  ;;  %v1365_v50 = vld [vmem:[#allocation11 + $0x8] sm:$0xff]   ;;  %v1366_v51 = vld [vmem:[#allocation11] sm:$0xff]  }
 0x13c   :  { %v1127_v52 = vpop.f32.mrf.mxu0 }
 0x13d   :  { %v1367_v52 = vld [vmem:[#allocation13 + $0x38] sm:$0xff]  }
 0x148   :  { %v1376_v53 = vpop.eup %1375 }
 0x149   :  { %v247_v55 = vadd.f32 1.0, %v1376_v53  ;;  %v1368_v53 = vld [vmem:[#allocation13 + $0x30] sm:$0xff]  }
 0x14b   :  { %v1823_v56 = vmul.f32 %v247_v55, %v244_v54 }
 0x14d   :  { %1161 = vmatmul.mubr.f32.vlgmr.msra.gmra.mxu1 %v1823_v56 }
 0x14e   :  { %1199 = vmatpush3.msra.mxu1 %v1679_v4  ;;  %1230 = vmatprep.mubr.msk.f32.mxu1 %vm1569_vm0, %v1568_v0 }
 0x14f   :  { %1200 = vmatprep.subr.mxu1 %v1568_v0 }
 0x150   :  { %1201 = vmatpush3.msra.mxu1 %v1681_v5  ;;  %v1353_v5 = vld [vmem:[#allocation10 + $0x28] sm:$0xff]  }
 0x151   :  { %1202 = vmatprep.subr.mxu1 %v1568_v0 }
 0x152   :  { %1203 = vmatpush3.msra.mxu1 %v1684_v7  ;;  %v1355_v7 = vld [vmem:[#allocation10 + $0x18] sm:$0xff]  }
 0x153   :  { %1204 = vmatprep.subr.mxu1 %v1568_v0 }
 0x154   :  { %1205 = vmatpush3.msra.mxu1 %v1687_v8  ;;  %v1356_v8 = vld [vmem:[#allocation10 + $0x10] sm:$0xff]  }
 0x155   :  { %1206 = vmatprep.subr.mxu1 %v1568_v0 }
 0x156   :  { %1207 = vmatpush3.msra.mxu1 %v1703_v15  ;;  %v572_v15 = vsub.s32 2, %v1811_v43 }
 0x157   :  { %1208 = vmatprep.subr.mxu1 %v1568_v0 }
 0x158   :  { %1209 = vmatpush3.msra.mxu1 %v1707_v16  ;;  %v568_v16 = vrot.slane %v1819_v45, %v1908_v14 }
 0x159   :  { %1210 = vmatprep.subr.mxu1 %v1568_v0 }
 0x15a   :  { %1211 = vmatpush3.msra.mxu1 %v1711_v17 }
 0x15b   :  { %1212 = vmatprep.subr.mxu1 %v1568_v0 }
 0x15c   :  { %1213 = vmatpush3.msra.mxu1 %v1715_v18  ;;  %v573_v18 = vrot.slane %v1819_v45, %v572_v15 }
 0x15d   :  { %1214 = vmatprep.subr.mxu1 %v1568_v0 }
 0x15e   :  { %1215 = vmatpush3.msra.mxu1 %v1718_v19 }
 0x15f   :  { %1216 = vmatprep.subr.mxu1 %v1568_v0 }
 0x160   :  { %1217 = vmatpush3.msra.mxu1 %v1721_v20 }
 0x161   :  { %1218 = vmatprep.subr.mxu1 %v1568_v0 }
 0x162   :  { %1219 = vmatpush3.msra.mxu1 %v1725_v21 }
 0x163   :  { %1220 = vmatprep.subr.mxu1 %v1568_v0 }
 0x164   :  { %1221 = vmatpush3.msra.mxu1 %v1729_v22 }
 0x165   :  { %1222 = vmatprep.subr.mxu1 %v1568_v0 }
 0x166   :  { %1223 = vmatpush3.msra.mxu1 %v1733_v23  ;;  %v575_v23 = vld [vmem:[%s1957_s6] sm:$0xf] }
 0x167   :  { %1224 = vmatprep.subr.mxu1 %v1568_v0 }
 0x168   :  { %1225 = vmatpush3.msra.mxu1 %v1737_v24  ;;  %v596_v24 = vrot.slane %v575_v23, %v1814_v44 }
 0x169   :  { %1226 = vmatprep.subr.mxu1 %v1568_v0 }
 0x16a   :  { %1227 = vmatpush3.msra.mxu1 %v1741_v25 }
 0x16b   :  { %1228 = vmatprep.subr.mxu1 %v1568_v0 }
 0x16c   :  { %1229 = vmatpush3.msra.mxu1 %v1745_v26 }
 0x16d   :  { %1268 = vmatprep.subr.bf16.mxu1 %v1568_v0 }
 0x20d   :  { %v347_v58 = vpop.f32.mrf.mxu1 }
 0x20e   :  { %1196 = vmatmul.mubr.f32.vlgmr.msra.gmra.mxu0 %v347_v58 }
 0x20f   :  { %v1162_v59 = vpop.f32.mrf.mxu1  ;;  %1234 = vmatpush3.msra.mxu0 %v1750_v27  ;;  %1265 = vmatprep.mubr.msk.f32.mxu0 %vm1569_vm0, %v1568_v0 }
 0x210   :  { %1235 = vmatprep.subr.mxu0 %v1568_v0 }
 0x211   :  { %1236 = vmatpush3.msra.mxu0 %v1752_v28 }
 0x212   :  { %1237 = vmatprep.subr.mxu0 %v1568_v0 }
 0x213   :  { %1238 = vmatpush3.msra.mxu0 %v1757_v29 }
 0x214   :  { %1239 = vmatprep.subr.mxu0 %v1568_v0 }
 0x215   :  { %1240 = vmatpush3.msra.mxu0 %v1761_v30 }
 0x216   :  { %1241 = vmatprep.subr.mxu0 %v1568_v0 }
 0x217   :  { %1242 = vmatpush3.msra.mxu0 %v1765_v31 }
 0x218   :  { %1243 = vmatprep.subr.mxu0 %v1568_v0 }
 0x219   :  { %1244 = vmatpush3.msra.mxu0 %v1769_v32 }
 0x21a   :  { %1245 = vmatprep.subr.mxu0 %v1568_v0 }
 0x21b   :  { %1246 = vmatpush3.msra.mxu0 %v1773_v33 }
 0x21c   :  { %1247 = vmatprep.subr.mxu0 %v1568_v0 }
 0x21d   :  { %1248 = vmatpush3.msra.mxu0 %v1777_v34 }
 0x21e   :  { %1249 = vmatprep.subr.mxu0 %v1568_v0 }
 0x21f   :  { %1250 = vmatpush3.msra.mxu0 %v1781_v35  ;;  %v1359_v35 = vld [vmem:[#allocation11 + $0x38] sm:$0xff]  }
 0x220   :  { %1251 = vmatprep.subr.mxu0 %v1568_v0 }
 0x221   :  { %1252 = vmatpush3.msra.mxu0 %v1785_v36  ;;  %v1360_v36 = vld [vmem:[#allocation11 + $0x30] sm:$0xff]  }
 0x222   :  { %1253 = vmatprep.subr.mxu0 %v1568_v0 }
 0x223   :  { %1254 = vmatpush3.msra.mxu0 %v1789_v37  ;;  %v696_v37 = vsub.s32 3, %v1811_v43  ;;  %v1373_v43 = vld [vmem:[#allocation13 + $0x8] sm:$0xff]  }
 0x224   :  { %1255 = vmatprep.subr.mxu0 %v1568_v0 }
 0x225   :  { %1256 = vmatpush3.msra.mxu0 %v1793_v38 }
 0x226   :  { %1257 = vmatprep.subr.mxu0 %v1568_v0 }
 0x227   :  { %1258 = vmatpush3.msra.mxu0 %v1797_v39 }
 0x228   :  { %1259 = vmatprep.subr.mxu0 %v1568_v0 }
 0x229   :  { %1260 = vmatpush3.msra.mxu0 %v1801_v40  ;;  %v697_v40 = vrot.slane %v575_v23, %v696_v37 }
 0x22a   :  { %1261 = vmatprep.subr.mxu0 %v1568_v0 }
 0x22b   :  { %1262 = vmatpush3.msra.mxu0 %v1805_v41 }
 0x22c   :  { %1263 = vmatprep.subr.mxu0 %v1568_v0 }
 0x22d   :  { %1264 = vmatpush3.msra.mxu0 %v265_v57  ;;  %v709_v57 = vrot.slane %v575_v23, %v1908_v14 }
 0x22e   :  { %1288 = vmatprep.subr.bf16.mxu0 %v1568_v0 }
 0x2ce   :  { %v417_v60 = vpop.f32.mrf.mxu0 }
 0x2cf   :  { %v421_v61 = vsub.f32 %v1823_v56, %v417_v60  ;;  %v714_v60 = vrot.slane %v575_v23, %v572_v15 }
 0x2d0   :  { %v1197_v62 = vpop.f32.mrf.mxu0 }
 0x2d1   :  { %v422_v63 = vmul.f32 %v421_v61, %v421_v61 }
 0x2d3   :  { %1231 = vmatmul.mubr.f32.vlgmr.msra.gmra.mxu1 %v422_v63 }
 0x2d4   :  { %1284 = vmatprep.mubr.msk.bf16.mxu1 %vm1569_vm0, %v1568_v0  ;;  %1269 = vmatpush3.bf16.msra.mxu1 %v1351_v1  ;;  %v1369_v1 = vld [vmem:[#allocation13 + $0x28] sm:$0xff]  }
 0x2d5   :  { %1270 = vmatprep.subr.bf16.mxu1 %v1568_v0 }
 0x2d8   :  { %1271 = vmatpush3.bf16.msra.mxu1 %v1352_v2  ;;  %v1370_v2 = vld [vmem:[#allocation13 + $0x20] sm:$0xff]  }
 0x2d9   :  { %1272 = vmatprep.subr.bf16.mxu1 %v1568_v0 }
 0x2dc   :  { %1273 = vmatpush3.bf16.msra.mxu1 %v1353_v5  ;;  %v1374_v5 = vld [vmem:[#allocation13] sm:$0xff]  }
 0x2dd   :  { %1274 = vmatprep.subr.bf16.mxu1 %v1568_v0 }
 0x2e0   :  { %1275 = vmatpush3.bf16.msra.mxu1 %v1354_v6  ;;  %v987_v6 = vld [vmem:[%s1959_s8] ss:$0 sm:$0xff]  ;;  %s1571_s8 = smov [#allocation14]  }
 0x2e1   :  { %1276 = vmatprep.subr.bf16.mxu1 %v1568_v0  ;;  %s959_s16 = sshll.u32 %s1571_s8, 4  ;;  %s960_s16 = int_to_ptr.vmem [resolvable:$true] %s959_s16 }
 0x2e2   :  { %p1532_p8 = scmp.lt.s32.totalorder %s960_s16, %s960_s16 }
 0x2e4   :  { %1277 = vmatpush3.bf16.msra.mxu1 %v1355_v7 }
 0x2e5   :  { %1278 = vmatprep.subr.bf16.mxu1 %v1568_v0 }
 0x2e8   :  { %1279 = vmatpush3.bf16.msra.mxu1 %v1356_v8 }
 0x2e9   :  { %1280 = vmatprep.subr.bf16.mxu1 %v1568_v0 }
 0x2ec   :  { %1281 = vmatpush3.bf16.msra.mxu1 %v1357_v9 }
 0x2ed   :  { %1282 = vmatprep.subr.bf16.mxu1 %v1568_v0 }
 0x2f0   :  { %1283 = vmatpush3.bf16.msra.mxu1 %v1358_v10 }
 0x2f1   :  { %1308 = vmatprep.subr.bf16.mxu1 %v1568_v0 }
 0x393   :  { %v489_v3 = vpop.f32.mrf.mxu1 }
 0x394   :  { %1266 = vmatmul.mubr.f32.vlgmr.msra.gmra.mxu0 %v489_v3  ;;  %v1371_v3 = vld [vmem:[#allocation13 + $0x18] sm:$0xff]  }
 0x395   :  { %v1232_v4 = vpop.f32.mrf.mxu1  ;;  %1304 = vmatprep.mubr.msk.bf16.mxu0 %vm1569_vm0, %v1568_v0  ;;  %1289 = vmatpush3.bf16.msra.mxu0 %v1359_v35 }
 0x396   :  { %1290 = vmatprep.subr.bf16.mxu0 %v1568_v0  ;;  %v1372_v4 = vld [vmem:[#allocation13 + $0x10] sm:$0xff]  }
 0x399   :  { %1291 = vmatpush3.bf16.msra.mxu0 %v1360_v36 }
 0x39a   :  { %1292 = vmatprep.subr.bf16.mxu0 %v1568_v0 }
 0x39d   :  { %1293 = vmatpush3.bf16.msra.mxu0 %v1361_v46 }
 0x39e   :  { %1294 = vmatprep.subr.bf16.mxu0 %v1568_v0 }
 0x3a1   :  { %1295 = vmatpush3.bf16.msra.mxu0 %v1362_v47 }
 0x3a2   :  { %1296 = vmatprep.subr.bf16.mxu0 %v1568_v0 }
 0x3a5   :  { %1297 = vmatpush3.bf16.msra.mxu0 %v1363_v48 }
 0x3a6   :  { %1298 = vmatprep.subr.bf16.mxu0 %v1568_v0 }
 0x3a9   :  { %1299 = vmatpush3.bf16.msra.mxu0 %v1364_v49 }
 0x3aa   :  { %1300 = vmatprep.subr.bf16.mxu0 %v1568_v0 }
 0x3ad   :  { %1301 = vmatpush3.bf16.msra.mxu0 %v1365_v50 }
 0x3ae   :  { %1302 = vmatprep.subr.bf16.mxu0 %v1568_v0 }
 0x3b1   :  { %1303 = vmatpush3.bf16.msra.mxu0 %v1366_v51 }
 0x454   :  { %v559_v11 = vpop.f32.mrf.mxu0 }
 0x455   :  { %v560_v12 = vadd.f32 1e-05, %v559_v11 }
 0x456   :  { %v1267_v13 = vpop.f32.mrf.mxu0 }
 0x457   :  { %1377 = vrsqrt.f32 %v560_v12 }
 0x464   :  { %v1378_v17 = vpop.eup %1377 }
 0x465   :  { %v564_v19 = vmul.f32 %v1378_v17, %v421_v61 }
 0x467   :  { %v569_v20 = vmul.f32 %v568_v16, %v564_v19 }
 0x469   :  { %v574_v21 = vadd.f32 %v573_v18, %v569_v20 }
 0x46b   :  { %v576_v22 = vpack.c.bf16 %v574_v21, %v574_v21 }
 0x46d   :  { %1285 = vmatmul.mubr.bf16.vlgmr.msra.gmra.mxu1 %v576_v22 }
 0x46e   :  { %1324 = vmatprep.mubr.msk.bf16.mxu1 %vm1569_vm0, %v1568_v0  ;;  %1309 = vmatpush3.bf16.msra.mxu1 %v1367_v52 }
 0x46f   :  { %1310 = vmatprep.subr.bf16.mxu1 %v1568_v0 }
 0x472   :  { %1311 = vmatpush3.bf16.msra.mxu1 %v1368_v53 }
 0x473   :  { %1312 = vmatprep.subr.bf16.mxu1 %v1568_v0 }
 0x476   :  { %1313 = vmatpush3.bf16.msra.mxu1 %v1369_v1 }
 0x477   :  { %1314 = vmatprep.subr.bf16.mxu1 %v1568_v0 }
 0x47a   :  { %1315 = vmatpush3.bf16.msra.mxu1 %v1370_v2 }
 0x47b   :  { %1316 = vmatprep.subr.bf16.mxu1 %v1568_v0 }
 0x47e   :  { %1317 = vmatpush3.bf16.msra.mxu1 %v1371_v3 }
 0x47f   :  { %1318 = vmatprep.subr.bf16.mxu1 %v1568_v0 }
 0x482   :  { %1319 = vmatpush3.bf16.msra.mxu1 %v1372_v4 }
 0x483   :  { %1320 = vmatprep.subr.bf16.mxu1 %v1568_v0 }
 0x486   :  { %1321 = vmatpush3.bf16.msra.mxu1 %v1373_v43 }
 0x487   :  { %1322 = vmatprep.subr.bf16.mxu1 %v1568_v0  ;;  %v833_v0 = vld [vmem:[%s1961_s10] sm:$0x3]  ;;  %s1527_s10 = scalar_lea.vmem %s960_s16, 128 }
 0x488   :  { %v854_v19 = vrot.slane %v833_v0, %v1814_v44  ;;  %vm943_vm1 = vcmp.gt.f32.partialorder %v833_v0, 0.5  ;;  %p1528_p7 = scmp.ne.s32.totalorder %s960_s16, %s1527_s10  ;;  %p1533_p9 = scmp.lt.s32.totalorder %s1527_s10, %s1527_s10 }
 0x48a   :  { %1323 = vmatpush3.bf16.msra.mxu1 %v1374_v5  ;;  %p1534_p10 = por %p1533_p9, %p1532_p8 }
 0x48c   :  { %p1535_p11 = pnand %p1534_p10, %p1528_p7 }
 0x52d   :  { %v679_v25 = vpop.f32.mrf.mxu1 }
 0x52e   :  { %v680_v26 = vadd.f32 %v679_v25, %v596_v24  ;;  %v1570_v25 = vmov 0  }
 0x52f   :  { %v1286_v27 = vpop.f32.mrf.mxu1 }
 0x530   :  { %v686_v28 = vmul.f32 0.70710677, %v680_v26  ;;  %v685_v32 = vmul.f32 0.5, %v680_v26  ;;  %v945_v26 = vsel %vm943_vm1, 1, %v1570_v25 }
 0x531   :  { %v682_v29 = vpop.f32.mrf.mxu1  ;;  %v949_v27 = vrot.slane %v945_v26, %v1908_v14 }
 0x532   :  { %1379 = verf.f32 %v686_v28 }
 0x533   :  { %v1287_v30 = vpop.f32.mrf.mxu1  ;;  %vm950_vm2 = vcmp.eq.s32.totalorder %v949_v27, 1 }
 0x53f   :  { %v1380_v31 = vpop.eup %1379 }
 0x540   :  { %v688_v33 = vadd.f32 1.0, %v1380_v31 }
 0x542   :  { %v689_v34 = vmul.f32 %v688_v33, %v685_v32 }
 0x544   :  { %690 = vadd.xlane.f32.xlu0 %v689_v34 }
 0x5cd   :  { %v691_v38 = vpop.xlane.xlu0 %690 }
 0x5ce   :  { %v692_v39 = vmul.f32 0.03125, %v691_v38 }
 0x5d0   :  { %v693_v41 = vsub.f32 %v689_v34, %v692_v39 }
 0x5d2   :  { %v698_v42 = vmul.f32 %v697_v40, %v693_v41 }
 0x5d4   :  { %v699_v45 = vmul.f32 %v698_v42, %v698_v42 }
 0x5d6   :  { %700 = vadd.xlane.f32.xlu0 %v699_v45 }
 0x65f   :  { %v701_v54 = vpop.xlane.xlu0 %700 }
 0x660   :  { %v702_v55 = vmul.f32 0.03125, %v701_v54 }
 0x662   :  { %v703_v56 = vadd.f32 1e-05, %v702_v55 }
 0x664   :  { %1381 = vrsqrt.f32 %v703_v56 }
 0x671   :  { %v1382_v58 = vpop.eup %1381 }
 0x672   :  { %v705_v59 = vmul.f32 %v1382_v58, %v698_v42 }
 0x674   :  { %v710_v61 = vmul.f32 %v709_v57, %v705_v59 }
 0x676   :  { %v715_v62 = vadd.f32 %v714_v60, %v710_v61 }
 0x678   :  { %v716_v63 = vpack.c.bf16 %v715_v62, %v715_v62 }
 0x67a   :  { %1305 = vmatmul.mubr.bf16.vlgmr.msra.gmra.mxu0 %v716_v63 }
 0x73a   :  { %v822_v7 = vpop.f32.mrf.mxu0 }
 0x73b   :  { %v823_v8 = vadd.f32 %v987_v6, %v822_v7 }
 0x73c   :  { %v1306_v9 = vpop.f32.mrf.mxu0 }
 0x73d   :  { %v829_v10 = vmul.f32 0.70710677, %v823_v8  ;;  %v828_v15 = vmul.f32 0.5, %v823_v8 }
 0x73e   :  { %v825_v11 = vpop.f32.mrf.mxu0 }
 0x73f   :  { %1383 = verf.f32 %v829_v10 }
 0x740   :  { %v1307_v12 = vpop.f32.mrf.mxu0 }
 0x74c   :  { %v1384_v13 = vpop.eup %1383 }
 0x74d   :  { %v831_v16 = vadd.f32 1.0, %v1384_v13 }
 0x74f   :  { %v832_v17 = vmul.f32 %v831_v16, %v828_v15 }
 0x751   :  { %v834_v18 = vpack.c.bf16 %v832_v17, %v832_v17 }
 0x753   :  { %1325 = vmatmul.mubr.bf16.vlgmr.msra.gmra.mxu1 %v834_v18 }
 0x813   :  { %v937_v20 = vpop.f32.mrf.mxu1 }
 0x814   :  { %v938_v21 = vadd.f32 %v937_v20, %v854_v19 }
 0x815   :  { %v1326_v22 = vpop.f32.mrf.mxu1 }
 0x816   :  { %1385 = vtanh.f32 %v938_v21 }
 0x817   :  { %v940_v23 = vpop.f32.mrf.mxu1 }
 0x819   :  { %v1327_v24 = vpop.f32.mrf.mxu1 }
 0x823   :  { %v1386_v28 = vpop.eup %1385 }
 0x824   :  { %v951_v29 = vsel %vm950_vm2, %v1386_v28, %v938_v21 }
 0x825   :  { %952 = vst [vmem:[#allocation14] sm:$0xff] %v951_v29 }
 0x826   :  { %1538 = shalt.err (!%p1535_p11)
}
 0x827   :  { %962 = dma.vmem_to_hbm [thread:$0]  %s960_s16, 128, %s1962_s11, [#allocation4]  }
 0x828   :  { %1555 = dma.done.wait [#allocation4], 128  }
 0x829   :  { %1556 = vsyncadd [#allocation4], 4294967168 }
 0x82a   :  { %966 = vsyncpa [#allocation3], 1 }
 0x82b   :  { %967 = vsyncpa [#allocation6], 1 }
 0x82c   :  { %968 = vsyncpa [#allocation9], 1 }
 0x82d   :  { %969 = vsyncpa [#allocation12], 1 }
 0x82e   :  { %970 = vsyncpa [#allocation4], 1 }

</bundles_post_ra>
